<compile_context>
chip_gen: v6e
topology: v6e:2x2x1
jax: 0.10.0
libtpu: 0.0.40
codegen_flags: <defaults>
</compile_context>

<pallas_src>
import functools

import jax
import jax.numpy as jnp
from jax import lax
from jax.experimental import pallas as pl
from jax.experimental.pallas import tpu as pltpu


def _complex_act_kernel(x_ref, o_ref, *, activation, use_phase):
    if not use_phase:
        # act(re) + 1j*act(im): the activation is applied independently to
        # each plane, so just apply it to the whole (2, tr, cols) block.
        o_ref[...] = activation(x_ref[...])
        return

    re = x_ref[0]
    im = x_ref[1]
    sq = re * re + im * im
    nonzero = sq > 0.0
    # One EUP rsqrt replaces sqrt + full-precision divide; the inf produced at
    # sq == 0 is masked by the where (select never propagates the inf).
    inv = jnp.where(nonzero, lax.rsqrt(sq), 0.0)
    mag = sq * inv                      # |z|
    a = activation(mag)                 # act(|z|)
    # angle(0+0j) == 0  ->  cos = 1, sin = 0 (matches torch.angle convention)
    cos_a = jnp.where(nonzero, re * inv, 1.0)
    sin_a = jnp.where(nonzero, im * inv, 0.0)
    o_ref[0] = a * cos_a
    o_ref[1] = a * sin_a


def generic_complex_activation(x, activation=jnp.tanh, use_phase=False,
                               *, tile_rows=512):
    """Complex activation. x: complex array of any shape."""
    x = jnp.asarray(x)
    orig_shape = x.shape

    re = jnp.real(x).astype(jnp.float32).reshape(-1)
    im = jnp.imag(x).astype(jnp.float32).reshape(-1)
    total = re.size

    # Lane-dense slab: 512 lanes when possible (large unmasked vst), else 128.
    cols = 512 if total >= 512 else 128
    padded = pl.cdiv(total, cols) * cols
    if padded != total:
        re = jnp.pad(re, (0, padded - total))
        im = jnp.pad(im, (0, padded - total))
    rows = padded // cols

    # (2, rows, cols): plane 0 = real, plane 1 = imag.  Single pallas operand.
    slab = jnp.stack([re.reshape(rows, cols), im.reshape(rows, cols)], axis=0)

    if rows <= tile_rows:
        tr = rows                              # single full-height block
    else:
        tr = max(8, (tile_rows // 8) * 8)      # (8,128)-aligned block rows
    grid = pl.cdiv(rows, tr)                   # ragged last block is masked

    kernel = functools.partial(_complex_act_kernel,
                               activation=activation, use_phase=use_phase)
    block = pl.BlockSpec((2, tr, cols), lambda i: (0, i, 0))

    n_elems = 2 * padded
    cost = pl.CostEstimate(
        flops=(10 * padded) if use_phase else n_elems,
        transcendentals=n_elems,
        bytes_accessed=2 * n_elems * 4,        # read slab + write slab (f32)
    )

    out = pl.pallas_call(
        kernel,
        out_shape=jax.ShapeDtypeStruct((2, rows, cols), jnp.float32),
        grid=(grid,),
        in_specs=[block],
        out_specs=block,
        compiler_params=pltpu.CompilerParams(
            dimension_semantics=("parallel",)),
        cost_estimate=cost,
    )(slab)

    ore = out[0].reshape(-1)[:total]
    oim = out[1].reshape(-1)[:total]
    return lax.complex(ore, oim).reshape(orig_shape)


def _reference(x, activation=jnp.tanh, use_phase=False):
    if use_phase:
        return (activation(jnp.abs(x)).astype(jnp.complex64)
                * jnp.exp(1j * jnp.angle(x)).astype(jnp.complex64))
    return (activation(jnp.real(x)).astype(jnp.complex64)
            + 1j * activation(jnp.imag(x)).astype(jnp.complex64))


if __name__ == "__main__":
    key = jax.random.PRNGKey(0)
    k_re, k_im = jax.random.split(key)
    N, C, H, W = 2, 4, 16, 16
    re = jax.random.normal(k_re, (N, C, H, W), dtype=jnp.float32)
    im = jax.random.normal(k_im, (N, C, H, W), dtype=jnp.float32)
    x = lax.complex(re, im)

    # Mode 1: act(real) + 1j*act(imag)
    y0 = jax.block_until_ready(
        generic_complex_activation(x, activation=jnp.tanh, use_phase=False))
    r0 = _reference(x, activation=jnp.tanh, use_phase=False)

    # Mode 2: act(|z|) * exp(1j*angle(z))
    y1 = jax.block_until_ready(
        generic_complex_activation(x, activation=jnp.tanh, use_phase=True))
    r1 = _reference(x, activation=jnp.tanh, use_phase=True)

    assert y0.shape == x.shape and y0.dtype == jnp.complex64
    assert y1.shape == x.shape and y1.dtype == jnp.complex64
    assert jnp.allclose(y0, r0, atol=1e-5, rtol=1e-5)
    assert jnp.allclose(y1, r1, atol=1e-5, rtol=1e-5)

    print("KERNEL_OK")
</pallas_src>

<mosaic_0001>
module attributes {stable_mosaic.version = 11 : i64} {
  func.func @_complex_act_kernel(%arg0: i32, %arg1: memref<2x4x512xf32, #tpu.memory_space<vmem>>, %arg2: memref<2x4x512xf32, #tpu.memory_space<vmem>>) attributes {dimension_semantics = [#tpu.dimension_semantics<parallel>], iteration_bounds = array<i64: 1>, scalar_prefetch = 0 : i64, scratch_operands = 0 : i64, tpu.core_type = #tpu.core_type<tc>, window_params = [{transform_indices = @transform_0, window_bounds = array<i64: 2, 4, 512>}, {transform_indices = @transform_1, window_bounds = array<i64: 2, 4, 512>}]} {
    %c0 = arith.constant 0 : index
    %c0_0 = arith.constant 0 : index
    %c0_1 = arith.constant 0 : index
    %0 = vector.load %arg1[%c0, %c0_0, %c0_1] : memref<2x4x512xf32, #tpu.memory_space<vmem>>, vector<2x4x512xf32>
    %1 = math.tanh %0 : vector<2x4x512xf32>
    %c0_2 = arith.constant 0 : index
    %c0_3 = arith.constant 0 : index
    %c0_4 = arith.constant 0 : index
    %2 = vector.load %arg2[%c0_2, %c0_3, %c0_4] : memref<2x4x512xf32, #tpu.memory_space<vmem>>, vector<2x4x512xf32>
    tpu.vector_store %arg2[%c0_2, %c0_3, %c0_4], %1 {strides = array<i32>} : memref<2x4x512xf32, #tpu.memory_space<vmem>>, vector<2x4x512xf32>,
    return
  }
  func.func @transform_0(%arg0: i32) -> (i32, i32, i32) {
    %c0_i32 = arith.constant 0 : i32
    %c0_i32_0 = arith.constant 0 : i32
    %c0_i32_1 = arith.constant 0 : i32
    return %c0_i32, %arg0, %c0_i32_0 : i32, i32, i32
  }
  func.func @transform_1(%arg0: i32) -> (i32, i32, i32) {
    %c0_i32 = arith.constant 0 : i32
    %c0_i32_0 = arith.constant 0 : i32
    %c0_i32_1 = arith.constant 0 : i32
    return %c0_i32, %arg0, %c0_i32_0 : i32, i32, i32
  }
}

</mosaic_0001>

<bundles_post_ra>
// kernel: tpu_custom_call.1
= control target key start
LH: loop header
LB: loop body
LE: loop exit
PB: predicated region body
PF: predicated region fallthrough
CT: control target
= control target key end

     0   :  { %6 = vsyncpa [#allocation3], 0  ;;  %s134_s0 = inlined_call_operand.hbm [shape: f32[2,4,512], index: 0, kind: input, shape index: {}]   ;;  %s135_s1 = inlined_call_operand.hbm [shape: f32[2,4,512], index: 1, kind: output, shape index: {}]  }
   0x1   :  { %7 = vsyncpa [#allocation4], 0  ;;  %s108_s6 = smov [#allocation2]  }
   0x2   :  { %s13_s7 = sshll.u32 %s108_s6, 4  ;;  %s14_s7 = int_to_ptr.vmem [resolvable:$true] %s13_s7 }
   0x3   :  { %s72_s8 = scalar_lea.vmem %s14_s7, 512  ;;  %p77_p1 = scmp.lt.s32.totalorder %s14_s7, %s14_s7 }
   0x4   :  { %p73_p0 = scmp.ne.s32.totalorder %s14_s7, %s72_s8  ;;  %p78_p2 = scmp.lt.s32.totalorder %s72_s8, %s72_s8 }
   0x6   :  { %p79_p3 = por %p78_p2, %p77_p1 }
   0x8   :  { %p80_p4 = pnand %p79_p3, %p73_p0 }
   0xa   :  { %83 = shalt.err (!%p80_p4)
}
   0xb   :  { %s109_s9 = smov 256   ;;  %s110_s10 = smov 16  }
   0xc   :  { %19 = dma.hbm_to_vmem [thread:$0]  %s134_s0, 512, %s14_s7, [#allocation3], %s109_s9, %s109_s9, %s110_s10  }
   0xd   :  { %104 = dma.done.wait [#allocation3], 512  }
   0xe   :  { %105 = vsyncadd [#allocation3], 4294966784  ;;  %v23_v0 = vld [vmem:[#allocation2] sm:$0xff]  ;;  %v24_v1 = vld [vmem:[#allocation2 + $0x8] sm:$0xff]  ;;  %s111_s13 = smov [#allocation5]  }
   0xf   :  { %v25_v2 = vld [vmem:[#allocation2 + $0x10] sm:$0xff]  ;;  %56 = vtanh.f32 %v23_v0  ;;  %v26_v3 = vld [vmem:[#allocation2 + $0x18] sm:$0xff]  ;;  %s40_s14 = sshll.u32 %s111_s13, 4  ;;  %s41_s14 = int_to_ptr.vmem [resolvable:$true] %s40_s14 }
  0x10   :  { %58 = vtanh.f32 %v24_v1  ;;  %s84_s0 = scalar_lea.vmem %s41_s14, 512  ;;  %p89_p6 = scmp.lt.s32.totalorder %s41_s14, %s41_s14 }
  0x11   :  { %60 = vtanh.f32 %v25_v2  ;;  %p85_p5 = scmp.ne.s32.totalorder %s41_s14, %s84_s0  ;;  %p90_p7 = scmp.lt.s32.totalorder %s84_s0, %s84_s0 }
  0x12   :  { %62 = vtanh.f32 %v26_v3 }
  0x13   :  { %p91_p8 = por %p90_p7, %p89_p6 }
  0x15   :  { %p92_p9 = pnand %p91_p8, %p85_p5 }
  0x1c   :  { %v57_v4 = vpop.eup %56 }
  0x1d   :  { %v59_v5 = vpop.eup %58  ;;  %31 = vst [vmem:[#allocation5] sm:$0xff] %v57_v4 }
  0x1e   :  { %v61_v6 = vpop.eup %60  ;;  %32 = vst [vmem:[#allocation5 + $0x8] sm:$0xff] %v59_v5 }
  0x1f   :  { %v63_v7 = vpop.eup %62  ;;  %33 = vst [vmem:[#allocation5 + $0x10] sm:$0xff] %v61_v6 }
  0x20   :  { %34 = vst [vmem:[#allocation5 + $0x18] sm:$0xff] %v63_v7 }
  0x21   :  { %95 = shalt.err (!%p92_p9)
}
  0x22   :  { %46 = dma.vmem_to_hbm [thread:$0]  %s41_s14, 512, %s135_s1, [#allocation4], %s109_s9, %s109_s9, %s110_s10  }
  0x23   :  { %106 = dma.done.wait [#allocation4], 512  }
  0x24   :  { %107 = vsyncadd [#allocation4], 4294966784 }
  0x25   :  { %50 = vsyncpa [#allocation3], 1 }
  0x26   :  { %51 = vsyncpa [#allocation4], 1 }

</bundles_post_ra>
